<compile_context>
chip_gen: v7x
topology: tpu7x:2x2x1
jax: 0.10.0
libtpu: 0.0.40
codegen_flags: <defaults>
</compile_context>

<pallas_src>
import numpy as np
import jax
import jax.numpy as jnp
from jax.experimental import pallas as pl
from jax.experimental.pallas import tpu as pltpu


def n_sh(sh_degree_max: int) -> int:
    return sum(2 * l + 1 for l in range(0, sh_degree_max + 1, 2))


# ---------------------------------------------------------------------------
# Pallas kernel: one block-diagonal matmul per N-row tile.
#   x_ref: (TN, G*L)   w_ref: (G*L, TI*TE*P*C)   o_ref: (TN, TI*TE*P*C)
# ---------------------------------------------------------------------------
def _s2_kernel(x_ref, w_ref, o_ref):
    o_ref[...] = jnp.dot(
        x_ref[...], w_ref[...], preferred_element_type=jnp.float32
    ).astype(o_ref.dtype)


def _choose_row_tiling(n: int, tile_n: int):
    """Tile the voxel axis with minimal padding (8-row granule), >= 2 tiles."""
    n8 = -(-n // 8) * 8                              # pad to sublane granule only
    tn_desired = max(8, (min(tile_n, n8) // 8) * 8)
    num_tiles = max(1, -(-n8 // tn_desired))
    if num_tiles == 1 and n8 >= 16:
        num_tiles = 2                                # v7x: keep both TCs busy
    tn = -(-(n8 // 8) // num_tiles) * 8              # ceil, multiple of 8
    n_pad = tn * num_tiles                           # waste < 8*num_tiles rows
    return tn, n_pad, num_tiles


def _build_output_basis(Y_gs: jax.Array) -> jax.Array:
    """(TI,TE,C,L,P) -> block-diagonal (G*L, TI*TE*P*C).

    Rows follow the contiguous (TI,TE,C,L) flattening of the SH coefficients;
    columns are permuted to (TI,TE,P,C) so the kernel output reshapes directly
    to the module's (N, TI, TE, P, C) result.  Y_gs is a fixed (non-trainable)
    basis, so in a real model this is computed once at init.
    """
    TI, TE, C, L, P = Y_gs.shape
    G = TI * TE * C
    eye = jnp.eye(G, dtype=Y_gs.dtype)
    W = jnp.einsum("glp,gh->glhp", Y_gs.reshape(G, L, P), eye)   # (G,L,G,P)
    W = W.reshape(G * L, TI, TE, C, P)
    W = jnp.transpose(W, (0, 1, 2, 4, 3))                        # (.,TI,TE,P,C)
    return W.reshape(G * L, TI * TE * P * C)


def so3_to_signal_pallas(x_dict, Y_gs, *, tile_n: int = 1024,
                         compute_dtype=jnp.float32):
    """Full SO3ToSignal.forward.

    x_dict: {l: (N, TI, TE, C, 2l+1, 2l+1)}  (even l)
    Y_gs:   (TI, TE, C, L, P)
    returns: (N, TI, TE, P, C) float32
    """
    degrees = sorted(x_dict.keys())
    # m=0 column of every Wigner-D block -> SH coefficients of degree l.
    parts = [x_dict[l][..., (2 * l + 1) // 2] for l in degrees]  # (N,TI,TE,C,2l+1)
    N, TI, TE, C = parts[0].shape[:4]
    P = Y_gs.shape[-1]
    L = sum(p.shape[-1] for p in parts)
    G = TI * TE * C

    if N < 128:
        # Tiny problem: a single fused XLA einsum beats pallas_call overhead.
        x = jnp.concatenate(parts, axis=4).astype(compute_dtype)
        return jnp.einsum(
            "nabcl,abclp->nabpc", x, Y_gs.astype(compute_dtype),
            preferred_element_type=jnp.float32,
        ).astype(jnp.float32)

    # (N, G*L) is the native contiguous layout of the slice+concat result, so
    # this is the single unavoidable materialization (no extra transpose pass).
    x2 = jnp.concatenate(parts, axis=4).reshape(N, G * L).astype(compute_dtype)

    # Block-diagonal basis with the (P, C) output permutation baked in.
    W = _build_output_basis(Y_gs).astype(compute_dtype)
    GL, GPO = W.shape                                # (G*L, TI*TE*P*C)

    tn, n_pad, num_tiles = _choose_row_tiling(N, tile_n)
    if n_pad != N:
        x2 = jnp.pad(x2, ((0, n_pad - N), (0, 0)))

    itemsize = jnp.dtype(compute_dtype).itemsize
    cost = pl.CostEstimate(
        flops=2 * N * G * L * P,
        transcendentals=0,
        bytes_accessed=n_pad * GL * itemsize + GL * GPO * itemsize + n_pad * GPO * 4,
    )

    out2 = pl.pallas_call(
        _s2_kernel,
        out_shape=jax.ShapeDtypeStruct((n_pad, GPO), jnp.float32),
        grid=(num_tiles,),
        in_specs=[
            # x tile: TN rows (sublanes) x full G*L columns.
            pl.BlockSpec((tn, GL), lambda i: (i, 0)),
            # W: whole array, constant index_map -> copied once, VMEM-resident.
            pl.BlockSpec((GL, GPO), lambda i: (0, 0)),
        ],
        out_specs=pl.BlockSpec((tn, GPO), lambda i: (i, 0)),
        compiler_params=pltpu.CompilerParams(
            dimension_semantics=("parallel",),
        ),
        cost_estimate=cost,
    )(x2, W)

    # Free reshape: the kernel already produced the (TI, TE, P, C) column order.
    return out2[:N].reshape(N, TI, TE, P, C)


# ---------------------------------------------------------------------------
# Main: deterministic synthetic inputs
# ---------------------------------------------------------------------------
if __name__ == "__main__":
    sh_degree_max = 4                      # even degrees 0, 2, 4
    N, TI, TE, C, P = 1000, 2, 2, 3, 16    # voxels, TI, TE, shells, grad dirs
    L = n_sh(sh_degree_max)                # 1 + 5 + 9 = 15

    key = jax.random.PRNGKey(0)
    k_y, k0, k2, k4 = jax.random.split(key, 4)

    # TODO(synk): in the real module Y_gs is the real (descoteaux) SH basis
    # evaluated at the gradient directions (fixed, non-trainable); here it is a
    # deterministic random tensor of the same shape (TI, TE, C, L, P).
    Y_gs = jax.random.normal(k_y, (TI, TE, C, L, P), dtype=jnp.float32)

    # Wigner-D coefficient dict, keyed by even degree l, blocks (2l+1, 2l+1).
    x_dict = {
        0: jax.random.normal(k0, (N, TI, TE, C, 1, 1), dtype=jnp.float32),
        2: jax.random.normal(k2, (N, TI, TE, C, 5, 5), dtype=jnp.float32),
        4: jax.random.normal(k4, (N, TI, TE, C, 9, 9), dtype=jnp.float32),
    }

    out = jax.block_until_ready(so3_to_signal_pallas(x_dict, Y_gs))

    # pure-JAX reference check
    parts = [x_dict[l][..., (2 * l + 1) // 2] for l in sorted(x_dict.keys())]
    x_ref = jnp.concatenate(parts, axis=4)
    ref = jnp.einsum("nabcl,abclp->nabpc", x_ref, Y_gs)

    assert out.shape == (N, TI, TE, P, C), out.shape
    assert np.allclose(np.asarray(out), np.asarray(ref), atol=1e-4, rtol=1e-4)
    print("KERNEL_OK")
</pallas_src>

<mosaic_0001>
module attributes {stable_mosaic.version = 11 : i64} {
  func.func @_s2_kernel(%arg0: i32, %arg1: memref<504x180xf32, #tpu.memory_space<vmem>>, %arg2: memref<180x192xf32, #tpu.memory_space<vmem>>, %arg3: memref<504x192xf32, #tpu.memory_space<vmem>>) attributes {dimension_semantics = [#tpu.dimension_semantics<parallel>], iteration_bounds = array<i64: 2>, scalar_prefetch = 0 : i64, scratch_operands = 0 : i64, tpu.core_type = #tpu.core_type<tc>, window_params = [{transform_indices = @transform_0, window_bounds = array<i64: 504, 180>}, {pipeline_mode = #tpu.pipeline_mode<synchronous>, transform_indices = @transform_1, window_bounds = array<i64: 180, 192>}, {transform_indices = @transform_2, window_bounds = array<i64: 504, 192>}]} {
    %c0 = arith.constant 0 : index
    %c0_0 = arith.constant 0 : index
    %0 = vector.load %arg1[%c0, %c0_0] : memref<504x180xf32, #tpu.memory_space<vmem>>, vector<504x180xf32>
    %c0_1 = arith.constant 0 : index
    %c0_2 = arith.constant 0 : index
    %1 = vector.load %arg2[%c0_1, %c0_2] : memref<180x192xf32, #tpu.memory_space<vmem>>, vector<180x192xf32>
    %cst = arith.constant dense<0.000000e+00> : vector<504x192xf32>
    %2 = tpu.matmul %0, %1, %cst {dimension_numbers = #tpu.dot_dimension_numbers<[1], [0], [0], [1], [0, 0, 1, 1], [], []>} : vector<504x180xf32>, vector<180x192xf32>, vector<504x192xf32> -> vector<504x192xf32>
    %c0_3 = arith.constant 0 : index
    %c0_4 = arith.constant 0 : index
    %3 = vector.load %arg3[%c0_3, %c0_4] : memref<504x192xf32, #tpu.memory_space<vmem>>, vector<504x192xf32>
    tpu.vector_store %arg3[%c0_3, %c0_4], %2 {strides = array<i32>} : memref<504x192xf32, #tpu.memory_space<vmem>>, vector<504x192xf32>,
    return
  }
  func.func @transform_0(%arg0: i32) -> (i32, i32) {
    %c0_i32 = arith.constant 0 : i32
    %c0_i32_0 = arith.constant 0 : i32
    return %arg0, %c0_i32 : i32, i32
  }
  func.func @transform_1(%arg0: i32) -> (i32, i32) {
    %c0_i32 = arith.constant 0 : i32
    %c0_i32_0 = arith.constant 0 : i32
    %c0_i32_1 = arith.constant 0 : i32
    return %c0_i32, %c0_i32_0 : i32, i32
  }
  func.func @transform_2(%arg0: i32) -> (i32, i32) {
    %c0_i32 = arith.constant 0 : i32
    %c0_i32_0 = arith.constant 0 : i32
    return %arg0, %c0_i32 : i32, i32
  }
}

</mosaic_0001>

<bundles_post_ra>
// kernel: tpu_custom_call.1
= control target key start
LH: loop header
LB: loop body
LE: loop exit
PB: predicated region body
PF: predicated region fallthrough
CT: control target
= control target key end

     0   :  { %s1326_s9 = smov 0   ;;  %s1870_s0 = inlined_call_operand.vmem [shape: f32[1008,180], index: 0, kind: input, shape index: {}]   ;;  %s1871_s1 = inlined_call_operand.vmem [shape: f32[180,192], index: 1, kind: input, shape index: {}]   ;;  %s1872_s2 = inlined_call_operand.vmem [shape: f32[1008,192], index: 2, kind: output, shape index: {}]  }
   0x1 LB: > { %s1149_s10 = sadd.s32 4294967295, %s1309_s9   ;;  %p1153_p0 = scmp.ge.s32.totalorder %s1309_s9, 1  ;;  %s1309_s9 = sphi %s1326_s9, %s12_s9  }
   0x2   : > { %p114_p1 = scmp.lt.s32.totalorder %s1309_s9, 3 }
   0x4   : > { %p115_p2 = pnand %p1153_p0, %p114_p1 }
   0x5   : > { %v279_v0 = vld [vmem:[%s1871_s1 + $0x8] sm:$0xff] (!%p115_p2)  ;;  %v281_v1 = vld [vmem:[%s1871_s1 + $0x18] sm:$0xff] (!%p115_p2)  ;;  %v278_v2 = vld [vmem:[%s1871_s1] sm:$0xff] (!%p115_p2)  ;;  %s138_s17 = smul.u32 (!%p115_p2), 63, %s1149_s10  ;;  %vm324_vm0 = vcmask (!%p115_p2), 424960   ;;  %vm514_vm1 = vcmask (!%p115_p2), 1043456  }
   0x6   : > { %118 = sbr.rel (%p115_p2) target bundleno = 392 (0x188), region = 28  ;;  %v1227_v3 = vpack.c.bf16 (!%p115_p2), %v281_v1, %v279_v0  ;;  %v280_v4 = vld [vmem:[%s1871_s1 + $0x10] sm:$0xff] (!%p115_p2)  ;;  %v283_v5 = vld [vmem:[%s1871_s1 + $0x28] sm:$0xff] (!%p115_p2)  ;;  %v285_v6 = vld [vmem:[%s1871_s1 + $0x38] sm:$0xff] (!%p115_p2)  ;;  %vm965_vm2 = vcmask (!%p115_p2), 523264  }
   0x7   : > { %v1229_v7 = vpack.c.bf16 (!%p115_p2), %v280_v4, %v278_v2  ;;  %v1231_v8 = vpack.c.bf16 (!%p115_p2), %v285_v6, %v283_v5  ;;  %v282_v9 = vld [vmem:[%s1871_s1 + $0x20] sm:$0xff] (!%p115_p2)  ;;  %v284_v10 = vld [vmem:[%s1871_s1 + $0x30] sm:$0xff] (!%p115_p2)  ;;  %v287_v11 = vld [vmem:[%s1871_s1 + $0x48] sm:$0xff] (!%p115_p2)  ;;  %p139_p3 = scmp.lt.s32.totalorder (!%p115_p2), %s138_s17, 125 }
   0x8   : > { %1228 = vmatprep.subr.bf16.mxu0 (!%p115_p2), %v1227_v3  ;;  %1271 = vmatprep.subr.bf16.mxu1 (!%p115_p2), %v1227_v3  ;;  %v289_v12 = vld [vmem:[%s1871_s1 + $0x58] sm:$0xff] (!%p115_p2)  ;;  %v1233_v13 = vpack.c.bf16 (!%p115_p2), %v284_v10, %v282_v9  ;;  %v286_v15 = vld [vmem:[%s1871_s1 + $0x40] sm:$0xff] (!%p115_p2)  ;;  %v288_v16 = vld [vmem:[%s1871_s1 + $0x50] sm:$0xff] (!%p115_p2) }
   0x9   : > { %1230 = vmatpush1.bf16.msra.mxu0 (!%p115_p2), %v1229_v7  ;;  %1283 = vmatpush1.bf16.msra.mxu1 (!%p115_p2), %v1229_v7  ;;  %v1235_v14 = vpack.c.bf16 (!%p115_p2), %v289_v12, %v287_v11  ;;  %v291_v17 = vld [vmem:[%s1871_s1 + $0x68] sm:$0xff] (!%p115_p2)  ;;  %v293_v18 = vld [vmem:[%s1871_s1 + $0x78] sm:$0xff] (!%p115_p2)  ;;  %v1237_v19 = vpack.c.bf16 (!%p115_p2), %v288_v16, %v286_v15  ;;  %v290_v21 = vld [vmem:[%s1871_s1 + $0x60] sm:$0xff] (!%p115_p2) }
   0xa   : > { %1232 = vmatprep.subr.bf16.mxu0 (!%p115_p2), %v1231_v8  ;;  %1272 = vmatprep.subr.bf16.mxu1 (!%p115_p2), %v1231_v8  ;;  %v1239_v20 = vpack.c.bf16 (!%p115_p2), %v293_v18, %v291_v17  ;;  %v292_v22 = vld [vmem:[%s1871_s1 + $0x70] sm:$0xff] (!%p115_p2)  ;;  %v295_v23 = vld [vmem:[%s1871_s1 + $0x88] sm:$0xff] (!%p115_p2)  ;;  %v297_v24 = vld [vmem:[%s1871_s1 + $0x98] sm:$0xff] (!%p115_p2) }
   0xb   : > { %v1241_v25 = vpack.c.bf16 (!%p115_p2), %v292_v22, %v290_v21  ;;  %v1243_v26 = vpack.c.bf16 (!%p115_p2), %v297_v24, %v295_v23  ;;  %v294_v27 = vld [vmem:[%s1871_s1 + $0x80] sm:$0xff] (!%p115_p2)  ;;  %v296_v28 = vld [vmem:[%s1871_s1 + $0x90] sm:$0xff] (!%p115_p2)  ;;  %v299_v29 = vld [vmem:[%s1871_s1 + $0xa8] sm:$0xff] (!%p115_p2) }
   0xc   : > { %v301_v30 = vld [vmem:[%s1871_s1 + $0xb8] sm:$0xff] (!%p115_p2)  ;;  %v1245_v32 = vpack.c.bf16 (!%p115_p2), %v296_v28, %v294_v27  ;;  %v298_v35 = vld [vmem:[%s1871_s1 + $0xa0] sm:$0xff] (!%p115_p2)  ;;  %v300_v36 = vld [vmem:[%s1871_s1 + $0xb0] sm:$0xff] (!%p115_p2) }
   0xd   : > { %s1874_s17 = smov (!%p139_p3, %s138_s17), 125  ;;  %1234 = vmatpush1.bf16.msra.mxu0 %v1233_v13  ;;  %1284 = vmatpush1.bf16.msra.mxu1 %v1233_v13  ;;  %v1247_v34 = vpack.c.bf16 %v301_v30, %v299_v29  ;;  %v303_v37 = vld [vmem:[%s1871_s1 + $0xc8] sm:$0xff]  ;;  %v305_v38 = vld [vmem:[%s1871_s1 + $0xd8] sm:$0xff]  ;;  %v1249_v39 = vpack.c.bf16 %v300_v36, %v298_v35  ;;  %v302_v41 = vld [vmem:[%s1871_s1 + $0xc0] sm:$0xff] }
   0xe   : > { %1236 = vmatprep.subr.bf16.mxu0 %v1235_v14  ;;  %1273 = vmatprep.subr.bf16.mxu1 %v1235_v14  ;;  %s1225_s18 = sshll.u32 %s1874_s17, 4  ;;  %v1251_v40 = vpack.c.bf16 %v305_v38, %v303_v37  ;;  %v304_v42 = vld [vmem:[%s1871_s1 + $0xd0] sm:$0xff]  ;;  %v307_v43 = vld [vmem:[%s1871_s1 + $0xe8] sm:$0xff]  ;;  %v309_v44 = vld [vmem:[%s1871_s1 + $0xf8] sm:$0xff] }
   0xf   : > { %s1396_s25 = scalar_lea.vmem %s1870_s0, %s1225_s18  ;;  %v1253_v45 = vpack.c.bf16 %v304_v42, %v302_v41  ;;  %v1255_v46 = vpack.c.bf16 %v309_v44, %v307_v43  ;;  %v306_v47 = vld [vmem:[%s1871_s1 + $0xe0] sm:$0xff]  ;;  %v308_v48 = vld [vmem:[%s1871_s1 + $0xf0] sm:$0xff]  ;;  %v311_v49 = vld [vmem:[%s1871_s1 + $0x108] sm:$0xff]  ;;  %s1676_s8 = scalar_lea.vmem %s1872_s2, %s1225_s18 }
  0x10   : > { %v153_v31 = vld [vmem:[%s1396_s25 + $0x8] sm:$0xff]  ;;  %v313_v50 = vld [vmem:[%s1871_s1 + $0x118] sm:$0xff]  ;;  %v1257_v51 = vpack.c.bf16 %v308_v48, %v306_v47  ;;  %v310_v53 = vld [vmem:[%s1871_s1 + $0x100] sm:$0xff] }
  0x11   : > { %1238 = vmatpush1.bf16.msra.mxu0 %v1237_v19  ;;  %1285 = vmatpush1.bf16.msra.mxu1 %v1237_v19  ;;  %v217_v33 = vld [vmem:[%s1396_s25 + $0x208] sm:$0xff]  ;;  %v1259_v52 = vpack.c.bf16 %v313_v50, %v311_v49  ;;  %v312_v54 = vld [vmem:[%s1871_s1 + $0x110] sm:$0xff]  ;;  %v317_v56 = vld [vmem:[%s1871_s1 + $0x138] sm:$0xff] }
  0x12   : > { %1240 = vmatprep.subr.bf16.mxu0 %v1239_v20  ;;  %1274 = vmatprep.subr.bf16.mxu1 %v1239_v20  ;;  %v315_v55 = vld [vmem:[%s1871_s1 + $0x128] sm:$0xff]  ;;  %v1261_v57 = vpack.c.bf16 %v312_v54, %v310_v53  ;;  %v314_v59 = vld [vmem:[%s1871_s1 + $0x120] sm:$0xff]  ;;  %v316_v60 = vld [vmem:[%s1871_s1 + $0x130] sm:$0xff] }
  0x13   : > { %1160 = vmatprep.mubr.msk.f32.mxu0 %vm324_vm0, %v153_v31  ;;  %1192 = vmatprep.mubr.msk.f32.mxu1 %vm324_vm0, %v217_v33  ;;  %v1263_v58 = vpack.c.bf16 %v317_v56, %v315_v55  ;;  %v319_v61 = vld [vmem:[%s1871_s1 + $0x148] sm:$0xff]  ;;  %v321_v62 = vld [vmem:[%s1871_s1 + $0x158] sm:$0xff]  ;;  %v1265_v63 = vpack.c.bf16 %v316_v60, %v314_v59  ;;  %v318_v1 = vld [vmem:[%s1871_s1 + $0x140] sm:$0xff] }
  0x14   : > { %v1267_v0 = vpack.c.bf16 %v321_v62, %v319_v61  ;;  %v320_v2 = vld [vmem:[%s1871_s1 + $0x150] sm:$0xff]  ;;  %v323_v4 = vld [vmem:[%s1871_s1 + $0x168] sm:$0xf]  ;;  %v322_v5 = vld [vmem:[%s1871_s1 + $0x160] sm:$0xf] }
  0x15   : > { %1242 = vmatpush1.bf16.msra.mxu0 %v1241_v25  ;;  %1286 = vmatpush1.bf16.msra.mxu1 %v1241_v25  ;;  %v1269_v3 = vpack.c.bf16 %v320_v2, %v318_v1  ;;  %v152_v6 = vld [vmem:[%s1396_s25] sm:$0xff]  ;;  %v155_v8 = vld [vmem:[%s1396_s25 + $0x18] sm:$0xff]  ;;  %v154_v10 = vld [vmem:[%s1396_s25 + $0x10] sm:$0xff] }
  0x16   : > { %1244 = vmatprep.subr.bf16.mxu0 %v1243_v26  ;;  %1275 = vmatprep.subr.bf16.mxu1 %v1243_v26  ;;  %v216_v7 = vld [vmem:[%s1396_s25 + $0x200] sm:$0xff]  ;;  %v219_v9 = vld [vmem:[%s1396_s25 + $0x218] sm:$0xff]  ;;  %v218_v11 = vld [vmem:[%s1396_s25 + $0x210] sm:$0xff] }
  0x17   : > { %v157_v12 = vld [vmem:[%s1396_s25 + $0x28] sm:$0xff]  ;;  %v156_v14 = vld [vmem:[%s1396_s25 + $0x20] sm:$0xff]  ;;  %v159_v16 = vld [vmem:[%s1396_s25 + $0x38] sm:$0xff] }
  0x18   : > { %v221_v13 = vld [vmem:[%s1396_s25 + $0x228] sm:$0xff]  ;;  %v220_v15 = vld [vmem:[%s1396_s25 + $0x220] sm:$0xff]  ;;  %v223_v17 = vld [vmem:[%s1396_s25 + $0x238] sm:$0xff] }
  0x19   : > { %1246 = vmatpush1.bf16.msra.mxu0 %v1245_v32  ;;  %1287 = vmatpush1.bf16.msra.mxu1 %v1245_v32  ;;  %v158_v18 = vld [vmem:[%s1396_s25 + $0x30] sm:$0xff]  ;;  %v161_v20 = vld [vmem:[%s1396_s25 + $0x48] sm:$0xff]  ;;  %v160_v22 = vld [vmem:[%s1396_s25 + $0x40] sm:$0xff] }
  0x1a   : > { %1248 = vmatprep.subr.bf16.mxu0 %v1247_v34  ;;  %1276 = vmatprep.subr.bf16.mxu1 %v1247_v34  ;;  %v222_v19 = vld [vmem:[%s1396_s25 + $0x230] sm:$0xff]  ;;  %v225_v21 = vld [vmem:[%s1396_s25 + $0x248] sm:$0xff]  ;;  %v224_v23 = vld [vmem:[%s1396_s25 + $0x240] sm:$0xff] }
  0x1b   : > { %v163_v24 = vld [vmem:[%s1396_s25 + $0x58] sm:$0xff]  ;;  %v162_v26 = vld [vmem:[%s1396_s25 + $0x50] sm:$0xff]  ;;  %v165_v28 = vld [vmem:[%s1396_s25 + $0x68] sm:$0xff] }
  0x1c   : > { %v227_v25 = vld [vmem:[%s1396_s25 + $0x258] sm:$0xff]  ;;  %v226_v27 = vld [vmem:[%s1396_s25 + $0x250] sm:$0xff]  ;;  %v229_v29 = vld [vmem:[%s1396_s25 + $0x268] sm:$0xff] }
  0x1d   : > { %1250 = vmatpush1.bf16.msra.mxu0 %v1249_v39  ;;  %1288 = vmatpush1.bf16.msra.mxu1 %v1249_v39  ;;  %v164_v30 = vld [vmem:[%s1396_s25 + $0x60] sm:$0xff]  ;;  %v167_v32 = vld [vmem:[%s1396_s25 + $0x78] sm:$0xff]  ;;  %v166_v34 = vld [vmem:[%s1396_s25 + $0x70] sm:$0xff] }
  0x1e   : > { %1252 = vmatprep.subr.bf16.mxu0 %v1251_v40  ;;  %1277 = vmatprep.subr.bf16.mxu1 %v1251_v40  ;;  %v228_v31 = vld [vmem:[%s1396_s25 + $0x260] sm:$0xff]  ;;  %v231_v33 = vld [vmem:[%s1396_s25 + $0x278] sm:$0xff]  ;;  %v230_v35 = vld [vmem:[%s1396_s25 + $0x270] sm:$0xff] }
  0x1f   : > { %v169_v36 = vld [vmem:[%s1396_s25 + $0x88] sm:$0xff]  ;;  %v168_v38 = vld [vmem:[%s1396_s25 + $0x80] sm:$0xff]  ;;  %v171_v40 = vld [vmem:[%s1396_s25 + $0x98] sm:$0xff] }
  0x20   : > { %v233_v37 = vld [vmem:[%s1396_s25 + $0x288] sm:$0xff]  ;;  %v232_v39 = vld [vmem:[%s1396_s25 + $0x280] sm:$0xff]  ;;  %v235_v41 = vld [vmem:[%s1396_s25 + $0x298] sm:$0xff] }
  0x21   : > { %1254 = vmatpush1.bf16.msra.mxu0 %v1253_v45  ;;  %1289 = vmatpush1.bf16.msra.mxu1 %v1253_v45  ;;  %v170_v42 = vld [vmem:[%s1396_s25 + $0x90] sm:$0xff]  ;;  %v173_v44 = vld [vmem:[%s1396_s25 + $0xa8] sm:$0xff]  ;;  %v236_v47 = vld [vmem:[%s1396_s25 + $0x2a0] sm:$0xff] }
  0x22   : > { %1256 = vmatprep.subr.bf16.mxu0 %v1255_v46  ;;  %1278 = vmatprep.subr.bf16.mxu1 %v1255_v46  ;;  %v234_v43 = vld [vmem:[%s1396_s25 + $0x290] sm:$0xff]  ;;  %v237_v45 = vld [vmem:[%s1396_s25 + $0x2a8] sm:$0xff]  ;;  %v172_v46 = vld [vmem:[%s1396_s25 + $0xa0] sm:$0xff] }
  0x23   : > { %v175_v48 = vld [vmem:[%s1396_s25 + $0xb8] sm:$0xff]  ;;  %v174_v50 = vld [vmem:[%s1396_s25 + $0xb0] sm:$0xff]  ;;  %v241_v53 = vld [vmem:[%s1396_s25 + $0x2c8] sm:$0xff] }
  0x24   : > { %v239_v49 = vld [vmem:[%s1396_s25 + $0x2b8] sm:$0xff]  ;;  %v176_v54 = vld [vmem:[%s1396_s25 + $0xc0] sm:$0xff]  ;;  %v242_v59 = vld [vmem:[%s1396_s25 + $0x2d0] sm:$0xff] }
  0x25   : > { %1258 = vmatpush1.bf16.msra.mxu0 %v1257_v51  ;;  %1290 = vmatpush1.bf16.msra.mxu1 %v1257_v51  ;;  %v238_v51 = vld [vmem:[%s1396_s25 + $0x2b0] sm:$0xff]  ;;  %v240_v55 = vld [vmem:[%s1396_s25 + $0x2c0] sm:$0xff]  ;;  %v179_v56 = vld [vmem:[%s1396_s25 + $0xd8] sm:$0xff] }
  0x26   : > { %1260 = vmatprep.subr.bf16.mxu0 %v1259_v52  ;;  %1279 = vmatprep.subr.bf16.mxu1 %v1259_v52  ;;  %v177_v52 = vld [vmem:[%s1396_s25 + $0xc8] sm:$0xff]  ;;  %v180_v62 = vld [vmem:[%s1396_s25 + $0xe0] sm:$0xff]  ;;  %v247_v1 = vld [vmem:[%s1396_s25 + $0x2f8] sm:$0xff] }
  0x27   : > { %v181_v60 = vld [vmem:[%s1396_s25 + $0xe8] sm:$0xff]  ;;  %v182_v2 = vld [vmem:[%s1396_s25 + $0xf0] sm:$0xff] }
  0x28   : > { %v245_v61 = vld [vmem:[%s1396_s25 + $0x2e8] sm:$0xff] }
  0x29   : > { %1262 = vmatpush1.bf16.msra.mxu0 %v1261_v57  ;;  %1291 = vmatpush1.bf16.msra.mxu1 %v1261_v57  ;;  %v243_v57 = vld [vmem:[%s1396_s25 + $0x2d8] sm:$0xff] }
  0x2a   : > { %1264 = vmatprep.subr.bf16.mxu0 %v1263_v58  ;;  %1280 = vmatprep.subr.bf16.mxu1 %v1263_v58  ;;  %v178_v58 = vld [vmem:[%s1396_s25 + $0xd0] sm:$0xff] }
  0x2d   : > { %1266 = vmatpush1.bf16.msra.mxu0 %v1265_v63  ;;  %1292 = vmatpush1.bf16.msra.mxu1 %v1265_v63  ;;  %v244_v63 = vld [vmem:[%s1396_s25 + $0x2e0] sm:$0xff] }
  0x2e   : > { %1268 = vmatprep.subr.bf16.mxu0 %v1267_v0  ;;  %1281 = vmatprep.subr.bf16.mxu1 %v1267_v0  ;;  %v183_v0 = vld [vmem:[%s1396_s25 + $0xf8] sm:$0xff] }
  0x31   : > { %1270 = vmatpush1.bf16.msra.mxu0 %v1269_v3  ;;  %1293 = vmatpush1.bf16.msra.mxu1 %v1269_v3  ;;  %v246_v3 = vld [vmem:[%s1396_s25 + $0x2f0] sm:$0xff] }
  0x32   : > { %1158 = vmatprep.subr.msk.mxu0 %vm514_vm1, %v323_v4  ;;  %1282 = vmatprep.subr.msk.mxu1 %vm514_vm1, %v323_v4  ;;  %v185_v4 = vld [vmem:[%s1396_s25 + $0x108] sm:$0xff] }
  0x35   : > { %1159 = vmatpush1.msk.msra.mxu0 %vm514_vm1, %v322_v5  ;;  %1294 = vmatpush1.msk.msra.mxu1 %vm514_vm1, %v322_v5  ;;  %v249_v5 = vld [vmem:[%s1396_s25 + $0x308] sm:$0xff] }
  0x36   : > { %586 = vmatmul.mubr.f32.vlgmr.msra.gmra.mrb[0].mxu0 %v152_v6  ;;  %778 = vmatmul.mubr.f32.vlgmr.msra.gmra.mrb[0].mxu1 %v216_v7  ;;  %v184_v6 = vld [vmem:[%s1396_s25 + $0x100] sm:$0xff] }
  0x37   : > { %1161 = vmatprep.mubr.msk.f32.mxu0 %vm324_vm0, %v155_v8  ;;  %1193 = vmatprep.mubr.msk.f32.mxu1 %vm324_vm0, %v219_v9  ;;  %v248_v7 = vld [vmem:[%s1396_s25 + $0x300] sm:$0xff]  ;;  %v187_v8 = vld [vmem:[%s1396_s25 + $0x118] sm:$0xff] }
  0x38   : > { %v251_v9 = vld [vmem:[%s1396_s25 + $0x318] sm:$0xff] }
  0x3a   : > { %592 = vmatmul.mubr.f32.gmra.mrb[2].mxu0 %v154_v10  ;;  %784 = vmatmul.mubr.f32.gmra.mrb[2].mxu1 %v218_v11  ;;  %v186_v10 = vld [vmem:[%s1396_s25 + $0x110] sm:$0xff] }
  0x3b   : > { %1162 = vmatprep.mubr.msk.f32.mxu0 %vm324_vm0, %v157_v12  ;;  %1194 = vmatprep.mubr.msk.f32.mxu1 %vm324_vm0, %v221_v13  ;;  %v250_v11 = vld [vmem:[%s1396_s25 + $0x310] sm:$0xff]  ;;  %v189_v12 = vld [vmem:[%s1396_s25 + $0x128] sm:$0xff] }
  0x3c   : > { %v253_v13 = vld [vmem:[%s1396_s25 + $0x328] sm:$0xff] }
  0x3e   : > { %598 = vmatmul.mubr.f32.gmra.mrb[4].mxu0 %v156_v14  ;;  %790 = vmatmul.mubr.f32.gmra.mrb[4].mxu1 %v220_v15  ;;  %v188_v14 = vld [vmem:[%s1396_s25 + $0x120] sm:$0xff] }
  0x3f   : > { %1163 = vmatprep.mubr.msk.f32.mxu0 %vm324_vm0, %v159_v16  ;;  %1195 = vmatprep.mubr.msk.f32.mxu1 %vm324_vm0, %v223_v17  ;;  %v252_v15 = vld [vmem:[%s1396_s25 + $0x320] sm:$0xff]  ;;  %v191_v16 = vld [vmem:[%s1396_s25 + $0x138] sm:$0xff] }
  0x40   : > { %v255_v17 = vld [vmem:[%s1396_s25 + $0x338] sm:$0xff] }
  0x42   : > { %604 = vmatmul.mubr.f32.gmra.mrb[6].mxu0 %v158_v18  ;;  %796 = vmatmul.mubr.f32.gmra.mrb[6].mxu1 %v222_v19  ;;  %v190_v18 = vld [vmem:[%s1396_s25 + $0x130] sm:$0xff] }
  0x43   : > { %1164 = vmatprep.mubr.msk.f32.mxu0 %vm324_vm0, %v161_v20  ;;  %1196 = vmatprep.mubr.msk.f32.mxu1 %vm324_vm0, %v225_v21  ;;  %v254_v19 = vld [vmem:[%s1396_s25 + $0x330] sm:$0xff]  ;;  %v193_v20 = vld [vmem:[%s1396_s25 + $0x148] sm:$0xff] }
  0x44   : > { %v257_v21 = vld [vmem:[%s1396_s25 + $0x348] sm:$0xff] }
  0x46   : > { %610 = vmatmul.mubr.f32.gmra.mrb[8].mxu0 %v160_v22  ;;  %802 = vmatmul.mubr.f32.gmra.mrb[8].mxu1 %v224_v23  ;;  %v192_v22 = vld [vmem:[%s1396_s25 + $0x140] sm:$0xff] }
  0x47   : > { %1165 = vmatprep.mubr.msk.f32.mxu0 %vm324_vm0, %v163_v24  ;;  %1197 = vmatprep.mubr.msk.f32.mxu1 %vm324_vm0, %v227_v25  ;;  %v256_v23 = vld [vmem:[%s1396_s25 + $0x340] sm:$0xff]  ;;  %v195_v24 = vld [vmem:[%s1396_s25 + $0x158] sm:$0xff] }
  0x48   : > { %v259_v25 = vld [vmem:[%s1396_s25 + $0x358] sm:$0xff] }
  0x4a   : > { %616 = vmatmul.mubr.f32.gmra.mrb[10].mxu0 %v162_v26  ;;  %808 = vmatmul.mubr.f32.gmra.mrb[10].mxu1 %v226_v27  ;;  %v194_v26 = vld [vmem:[%s1396_s25 + $0x150] sm:$0xff] }
  0x4b   : > { %1166 = vmatprep.mubr.msk.f32.mxu0 %vm324_vm0, %v165_v28  ;;  %1198 = vmatprep.mubr.msk.f32.mxu1 %vm324_vm0, %v229_v29  ;;  %v258_v27 = vld [vmem:[%s1396_s25 + $0x350] sm:$0xff]  ;;  %v197_v28 = vld [vmem:[%s1396_s25 + $0x168] sm:$0xff] }
  0x4c   : > { %v261_v29 = vld [vmem:[%s1396_s25 + $0x368] sm:$0xff] }
  0x4e   : > { %622 = vmatmul.mubr.f32.gmra.mrb[12].mxu0 %v164_v30  ;;  %814 = vmatmul.mubr.f32.gmra.mrb[12].mxu1 %v228_v31  ;;  %v196_v30 = vld [vmem:[%s1396_s25 + $0x160] sm:$0xff] }
  0x4f   : > { %1167 = vmatprep.mubr.msk.f32.mxu0 %vm324_vm0, %v167_v32  ;;  %1199 = vmatprep.mubr.msk.f32.mxu1 %vm324_vm0, %v231_v33  ;;  %v260_v31 = vld [vmem:[%s1396_s25 + $0x360] sm:$0xff]  ;;  %v199_v32 = vld [vmem:[%s1396_s25 + $0x178] sm:$0xff] }
  0x50   : > { %v263_v33 = vld [vmem:[%s1396_s25 + $0x378] sm:$0xff] }
  0x52   : > { %628 = vmatmul.mubr.f32.gmra.mrb[14].mxu0 %v166_v34  ;;  %820 = vmatmul.mubr.f32.gmra.mrb[14].mxu1 %v230_v35  ;;  %v198_v34 = vld [vmem:[%s1396_s25 + $0x170] sm:$0xff] }
  0x53   : > { %1168 = vmatprep.mubr.msk.f32.mxu0 %vm324_vm0, %v169_v36  ;;  %1200 = vmatprep.mubr.msk.f32.mxu1 %vm324_vm0, %v233_v37  ;;  %v262_v35 = vld [vmem:[%s1396_s25 + $0x370] sm:$0xff]  ;;  %v201_v36 = vld [vmem:[%s1396_s25 + $0x188] sm:$0xff] }
  0x54   : > { %v265_v37 = vld [vmem:[%s1396_s25 + $0x388] sm:$0xff] }
  0x56   : > { %634 = vmatmul.mubr.f32.gmra.mrb[16].mxu0 %v168_v38  ;;  %826 = vmatmul.mubr.f32.gmra.mrb[16].mxu1 %v232_v39  ;;  %v200_v38 = vld [vmem:[%s1396_s25 + $0x180] sm:$0xff] }
  0x57   : > { %1169 = vmatprep.mubr.msk.f32.mxu0 %vm324_vm0, %v171_v40  ;;  %1201 = vmatprep.mubr.msk.f32.mxu1 %vm324_vm0, %v235_v41  ;;  %v264_v39 = vld [vmem:[%s1396_s25 + $0x380] sm:$0xff]  ;;  %v203_v40 = vld [vmem:[%s1396_s25 + $0x198] sm:$0xff] }
  0x58   : > { %v267_v41 = vld [vmem:[%s1396_s25 + $0x398] sm:$0xff] }
  0x5a   : > { %640 = vmatmul.mubr.f32.gmra.mrb[18].mxu0 %v170_v42  ;;  %832 = vmatmul.mubr.f32.gmra.mrb[18].mxu1 %v234_v43  ;;  %v202_v42 = vld [vmem:[%s1396_s25 + $0x190] sm:$0xff] }
  0x5b   : > { %1170 = vmatprep.mubr.msk.f32.mxu0 %vm324_vm0, %v173_v44  ;;  %1202 = vmatprep.mubr.msk.f32.mxu1 %vm324_vm0, %v237_v45  ;;  %v266_v43 = vld [vmem:[%s1396_s25 + $0x390] sm:$0xff]  ;;  %v205_v44 = vld [vmem:[%s1396_s25 + $0x1a8] sm:$0xff] }
  0x5c   : > { %v269_v45 = vld [vmem:[%s1396_s25 + $0x3a8] sm:$0xff] }
  0x5e   : > { %646 = vmatmul.mubr.f32.gmra.mrb[20].mxu0 %v172_v46  ;;  %838 = vmatmul.mubr.f32.gmra.mrb[20].mxu1 %v236_v47  ;;  %v204_v46 = vld [vmem:[%s1396_s25 + $0x1a0] sm:$0xff] }
  0x5f   : > { %1171 = vmatprep.mubr.msk.f32.mxu0 %vm324_vm0, %v175_v48  ;;  %1203 = vmatprep.mubr.msk.f32.mxu1 %vm324_vm0, %v239_v49  ;;  %v268_v47 = vld [vmem:[%s1396_s25 + $0x3a0] sm:$0xff]  ;;  %v207_v48 = vld [vmem:[%s1396_s25 + $0x1b8] sm:$0xff] }
  0x60   : > { %v271_v49 = vld [vmem:[%s1396_s25 + $0x3b8] sm:$0xff] }
  0x62   : > { %652 = vmatmul.mubr.f32.gmra.mrb[22].mxu0 %v174_v50  ;;  %844 = vmatmul.mubr.f32.gmra.mrb[22].mxu1 %v238_v51  ;;  %v206_v50 = vld [vmem:[%s1396_s25 + $0x1b0] sm:$0xff] }
  0x63   : > { %1172 = vmatprep.mubr.msk.f32.mxu0 %vm324_vm0, %v177_v52  ;;  %1204 = vmatprep.mubr.msk.f32.mxu1 %vm324_vm0, %v241_v53  ;;  %v270_v51 = vld [vmem:[%s1396_s25 + $0x3b0] sm:$0xff]  ;;  %v209_v52 = vld [vmem:[%s1396_s25 + $0x1c8] sm:$0xff] }
  0x64   : > { %v273_v53 = vld [vmem:[%s1396_s25 + $0x3c8] sm:$0xff] }
  0x66   : > { %658 = vmatmul.mubr.f32.gmra.mrb[24].mxu0 %v176_v54  ;;  %850 = vmatmul.mubr.f32.gmra.mrb[24].mxu1 %v240_v55  ;;  %v208_v54 = vld [vmem:[%s1396_s25 + $0x1c0] sm:$0xff] }
  0x67   : > { %1173 = vmatprep.mubr.msk.f32.mxu0 %vm324_vm0, %v179_v56  ;;  %1205 = vmatprep.mubr.msk.f32.mxu1 %vm324_vm0, %v243_v57  ;;  %v272_v55 = vld [vmem:[%s1396_s25 + $0x3c0] sm:$0xff]  ;;  %v211_v56 = vld [vmem:[%s1396_s25 + $0x1d8] sm:$0xff] }
  0x68   : > { %v275_v57 = vld [vmem:[%s1396_s25 + $0x3d8] sm:$0xff] }
  0x6a   : > { %664 = vmatmul.mubr.f32.gmra.mrb[26].mxu0 %v178_v58  ;;  %856 = vmatmul.mubr.f32.gmra.mrb[26].mxu1 %v242_v59  ;;  %v210_v58 = vld [vmem:[%s1396_s25 + $0x1d0] sm:$0xff] }
  0x6b   : > { %1174 = vmatprep.mubr.msk.f32.mxu0 %vm324_vm0, %v181_v60  ;;  %1206 = vmatprep.mubr.msk.f32.mxu1 %vm324_vm0, %v245_v61  ;;  %v274_v59 = vld [vmem:[%s1396_s25 + $0x3d0] sm:$0xff]  ;;  %v213_v60 = vld [vmem:[%s1396_s25 + $0x1e8] sm:$0xff] }
  0x6c   : > { %v277_v61 = vld [vmem:[%s1396_s25 + $0x3e8] sm:$0xff] }
  0x6e   : > { %670 = vmatmul.mubr.f32.gmra.mrb[28].mxu0 %v180_v62  ;;  %862 = vmatmul.mubr.f32.gmra.mrb[28].mxu1 %v244_v63  ;;  %v212_v62 = vld [vmem:[%s1396_s25 + $0x1e0] sm:$0xff] }
  0x6f   : > { %1175 = vmatprep.mubr.msk.f32.mxu0 %vm324_vm0, %v183_v0  ;;  %1207 = vmatprep.mubr.msk.f32.mxu1 %vm324_vm0, %v247_v1  ;;  %v276_v63 = vld [vmem:[%s1396_s25 + $0x3e0] sm:$0xff]  ;;  %v215_v0 = vld [vmem:[%s1396_s25 + $0x1f8] sm:$0xff]  ;;  %v214_v1 = vld [vmem:[%s1396_s25 + $0x1f0] sm:$0xff] }
  0x72   : > { %676 = vmatmul.mubr.f32.gmra.mrb[30].mxu0 %v182_v2  ;;  %868 = vmatmul.mubr.f32.gmra.mrb[30].mxu1 %v246_v3 }
  0x73   : > { %1176 = vmatprep.mubr.msk.f32.mxu0 %vm324_vm0, %v185_v4  ;;  %1208 = vmatprep.mubr.msk.f32.mxu1 %vm324_vm0, %v249_v5 }
  0x76   : > { %682 = vmatmul.mubr.f32.gmra.mrb[32].mxu0 %v184_v6  ;;  %874 = vmatmul.mubr.f32.gmra.mrb[32].mxu1 %v248_v7 }
  0x77   : > { %1177 = vmatprep.mubr.msk.f32.mxu0 %vm324_vm0, %v187_v8  ;;  %1209 = vmatprep.mubr.msk.f32.mxu1 %vm324_vm0, %v251_v9 }
  0x7a   : > { %688 = vmatmul.mubr.f32.gmra.mrb[34].mxu0 %v186_v10  ;;  %880 = vmatmul.mubr.f32.gmra.mrb[34].mxu1 %v250_v11 }
  0x7b   : > { %1178 = vmatprep.mubr.msk.f32.mxu0 %vm324_vm0, %v189_v12  ;;  %1210 = vmatprep.mubr.msk.f32.mxu1 %vm324_vm0, %v253_v13 }
  0x7e   : > { %694 = vmatmul.mubr.f32.gmra.mrb[36].mxu0 %v188_v14  ;;  %886 = vmatmul.mubr.f32.gmra.mrb[36].mxu1 %v252_v15 }
  0x7f   : > { %1179 = vmatprep.mubr.msk.f32.mxu0 %vm324_vm0, %v191_v16  ;;  %1211 = vmatprep.mubr.msk.f32.mxu1 %vm324_vm0, %v255_v17 }
  0x82   : > { %700 = vmatmul.mubr.f32.gmra.mrb[38].mxu0 %v190_v18  ;;  %892 = vmatmul.mubr.f32.gmra.mrb[38].mxu1 %v254_v19 }
  0x83   : > { %1180 = vmatprep.mubr.msk.f32.mxu0 %vm324_vm0, %v193_v20  ;;  %1212 = vmatprep.mubr.msk.f32.mxu1 %vm324_vm0, %v257_v21 }
  0x86   : > { %706 = vmatmul.mubr.f32.gmra.mrb[40].mxu0 %v192_v22  ;;  %898 = vmatmul.mubr.f32.gmra.mrb[40].mxu1 %v256_v23 }
  0x87   : > { %1181 = vmatprep.mubr.msk.f32.mxu0 %vm324_vm0, %v195_v24  ;;  %1213 = vmatprep.mubr.msk.f32.mxu1 %vm324_vm0, %v259_v25 }
  0x8a   : > { %712 = vmatmul.mubr.f32.gmra.mrb[42].mxu0 %v194_v26  ;;  %904 = vmatmul.mubr.f32.gmra.mrb[42].mxu1 %v258_v27 }
  0x8b   : > { %1182 = vmatprep.mubr.msk.f32.mxu0 %vm324_vm0, %v197_v28  ;;  %1214 = vmatprep.mubr.msk.f32.mxu1 %vm324_vm0, %v261_v29 }
  0x8e   : > { %718 = vmatmul.mubr.f32.gmra.mrb[44].mxu0 %v196_v30  ;;  %910 = vmatmul.mubr.f32.gmra.mrb[44].mxu1 %v260_v31 }
  0x8f   : > { %1183 = vmatprep.mubr.msk.f32.mxu0 %vm324_vm0, %v199_v32  ;;  %1215 = vmatprep.mubr.msk.f32.mxu1 %vm324_vm0, %v263_v33 }
  0x92   : > { %724 = vmatmul.mubr.f32.gmra.mrb[46].mxu0 %v198_v34  ;;  %916 = vmatmul.mubr.f32.gmra.mrb[46].mxu1 %v262_v35 }
  0x93   : > { %1184 = vmatprep.mubr.msk.f32.mxu0 %vm324_vm0, %v201_v36  ;;  %1216 = vmatprep.mubr.msk.f32.mxu1 %vm324_vm0, %v265_v37 }
  0x96   : > { %730 = vmatmul.mubr.f32.gmra.mrb[48].mxu0 %v200_v38  ;;  %922 = vmatmul.mubr.f32.gmra.mrb[48].mxu1 %v264_v39 }
  0x97   : > { %1185 = vmatprep.mubr.msk.f32.mxu0 %vm324_vm0, %v203_v40  ;;  %1217 = vmatprep.mubr.msk.f32.mxu1 %vm324_vm0, %v267_v41 }
  0x9a   : > { %736 = vmatmul.mubr.f32.gmra.mrb[50].mxu0 %v202_v42  ;;  %928 = vmatmul.mubr.f32.gmra.mrb[50].mxu1 %v266_v43 }
  0x9b   : > { %1186 = vmatprep.mubr.msk.f32.mxu0 %vm324_vm0, %v205_v44  ;;  %1218 = vmatprep.mubr.msk.f32.mxu1 %vm324_vm0, %v269_v45 }
  0x9e   : > { %742 = vmatmul.mubr.f32.gmra.mrb[52].mxu0 %v204_v46  ;;  %934 = vmatmul.mubr.f32.gmra.mrb[52].mxu1 %v268_v47 }
  0x9f   : > { %1187 = vmatprep.mubr.msk.f32.mxu0 %vm324_vm0, %v207_v48  ;;  %1219 = vmatprep.mubr.msk.f32.mxu1 %vm324_vm0, %v271_v49 }
  0xa2   : > { %748 = vmatmul.mubr.f32.gmra.mrb[54].mxu0 %v206_v50  ;;  %940 = vmatmul.mubr.f32.gmra.mrb[54].mxu1 %v270_v51 }
  0xa3   : > { %1188 = vmatprep.mubr.msk.f32.mxu0 %vm324_vm0, %v209_v52  ;;  %1220 = vmatprep.mubr.msk.f32.mxu1 %vm324_vm0, %v273_v53 }
  0xa6   : > { %754 = vmatmul.mubr.f32.gmra.mrb[56].mxu0 %v208_v54  ;;  %946 = vmatmul.mubr.f32.gmra.mrb[56].mxu1 %v272_v55 }
  0xa7   : > { %1189 = vmatprep.mubr.msk.f32.mxu0 %vm324_vm0, %v211_v56  ;;  %1221 = vmatprep.mubr.msk.f32.mxu1 %vm324_vm0, %v275_v57 }
  0xaa   : > { %760 = vmatmul.mubr.f32.gmra.mrb[58].mxu0 %v210_v58  ;;  %952 = vmatmul.mubr.f32.gmra.mrb[58].mxu1 %v274_v59 }
  0xab   : > { %1190 = vmatprep.mubr.msk.f32.mxu0 %vm324_vm0, %v213_v60  ;;  %1222 = vmatprep.mubr.msk.f32.mxu1 %vm324_vm0, %v277_v61 }
  0xae   : > { %766 = vmatmul.mubr.f32.gmra.mrb[60].mxu0 %v212_v62  ;;  %958 = vmatmul.mubr.f32.gmra.mrb[60].mxu1 %v276_v63 }
  0xaf   : > { %1191 = vmatprep.mubr.msk.f32.mxu0 %vm324_vm0, %v215_v0 }
  0xb2   : > { %772 = vmatmul.mubr.f32.gmra.mrb[62].mxu0 %v214_v1 }
 0x109   : > { %v587_v2 = vpop.f32.mrb[0].mxu0  ;;  %v779_v3 = vpop.f32.mrb[0].mxu1 }
 0x10a   : > { %964 = vst [vmem:[%s1676_s8] sm:$0xff] %v587_v2  ;;  %v589_v4 = vpop.f32.mrb[1].mxu0  ;;  %1029 = vst [vmem:[%s1676_s8 + $0x200] sm:$0xff] %v779_v3  ;;  %v781_v5 = vpop.f32.mrb[1].mxu1 }
 0x10b   : > { %966 = vst.msk [vmem:[%s1676_s8 + $0x8] sm:$0xff] %vm965_vm2, %v589_v4  ;;  %1030 = vst.msk [vmem:[%s1676_s8 + $0x208] sm:$0xff] %vm965_vm2, %v781_v5 }
 0x10d   : > { %v593_v6 = vpop.f32.mrb[2].mxu0  ;;  %v785_v7 = vpop.f32.mrb[2].mxu1 }
 0x10e   : > { %967 = vst [vmem:[%s1676_s8 + $0x10] sm:$0xff] %v593_v6  ;;  %v595_v8 = vpop.f32.mrb[3].mxu0  ;;  %1031 = vst [vmem:[%s1676_s8 + $0x210] sm:$0xff] %v785_v7  ;;  %v787_v9 = vpop.f32.mrb[3].mxu1 }
 0x10f   : > { %968 = vst.msk [vmem:[%s1676_s8 + $0x18] sm:$0xff] %vm965_vm2, %v595_v8  ;;  %1032 = vst.msk [vmem:[%s1676_s8 + $0x218] sm:$0xff] %vm965_vm2, %v787_v9 }
 0x111   : > { %v599_v10 = vpop.f32.mrb[4].mxu0  ;;  %v791_v11 = vpop.f32.mrb[4].mxu1 }
 0x112   : > { %969 = vst [vmem:[%s1676_s8 + $0x20] sm:$0xff] %v599_v10  ;;  %v601_v12 = vpop.f32.mrb[5].mxu0  ;;  %1033 = vst [vmem:[%s1676_s8 + $0x220] sm:$0xff] %v791_v11  ;;  %v793_v13 = vpop.f32.mrb[5].mxu1 }
 0x113   : > { %970 = vst.msk [vmem:[%s1676_s8 + $0x28] sm:$0xff] %vm965_vm2, %v601_v12  ;;  %1034 = vst.msk [vmem:[%s1676_s8 + $0x228] sm:$0xff] %vm965_vm2, %v793_v13 }
 0x115   : > { %v605_v14 = vpop.f32.mrb[6].mxu0  ;;  %v797_v15 = vpop.f32.mrb[6].mxu1 }
 0x116   : > { %971 = vst [vmem:[%s1676_s8 + $0x30] sm:$0xff] %v605_v14  ;;  %v607_v16 = vpop.f32.mrb[7].mxu0  ;;  %1035 = vst [vmem:[%s1676_s8 + $0x230] sm:$0xff] %v797_v15  ;;  %v799_v17 = vpop.f32.mrb[7].mxu1 }
 0x117   : > { %972 = vst.msk [vmem:[%s1676_s8 + $0x38] sm:$0xff] %vm965_vm2, %v607_v16  ;;  %1036 = vst.msk [vmem:[%s1676_s8 + $0x238] sm:$0xff] %vm965_vm2, %v799_v17 }
 0x119   : > { %v611_v18 = vpop.f32.mrb[8].mxu0  ;;  %v803_v19 = vpop.f32.mrb[8].mxu1 }
 0x11a   : > { %973 = vst [vmem:[%s1676_s8 + $0x40] sm:$0xff] %v611_v18  ;;  %v613_v20 = vpop.f32.mrb[9].mxu0  ;;  %1037 = vst [vmem:[%s1676_s8 + $0x240] sm:$0xff] %v803_v19  ;;  %v805_v21 = vpop.f32.mrb[9].mxu1 }
 0x11b   : > { %974 = vst.msk [vmem:[%s1676_s8 + $0x48] sm:$0xff] %vm965_vm2, %v613_v20  ;;  %1038 = vst.msk [vmem:[%s1676_s8 + $0x248] sm:$0xff] %vm965_vm2, %v805_v21 }
 0x11d   : > { %v617_v22 = vpop.f32.mrb[10].mxu0  ;;  %v809_v23 = vpop.f32.mrb[10].mxu1 }
 0x11e   : > { %975 = vst [vmem:[%s1676_s8 + $0x50] sm:$0xff] %v617_v22  ;;  %v619_v24 = vpop.f32.mrb[11].mxu0  ;;  %1039 = vst [vmem:[%s1676_s8 + $0x250] sm:$0xff] %v809_v23  ;;  %v811_v25 = vpop.f32.mrb[11].mxu1 }
 0x11f   : > { %976 = vst.msk [vmem:[%s1676_s8 + $0x58] sm:$0xff] %vm965_vm2, %v619_v24  ;;  %1040 = vst.msk [vmem:[%s1676_s8 + $0x258] sm:$0xff] %vm965_vm2, %v811_v25 }
 0x121   : > { %v623_v26 = vpop.f32.mrb[12].mxu0  ;;  %v815_v27 = vpop.f32.mrb[12].mxu1 }
 0x122   : > { %977 = vst [vmem:[%s1676_s8 + $0x60] sm:$0xff] %v623_v26  ;;  %v625_v28 = vpop.f32.mrb[13].mxu0  ;;  %1041 = vst [vmem:[%s1676_s8 + $0x260] sm:$0xff] %v815_v27  ;;  %v817_v29 = vpop.f32.mrb[13].mxu1 }
 0x123   : > { %978 = vst.msk [vmem:[%s1676_s8 + $0x68] sm:$0xff] %vm965_vm2, %v625_v28  ;;  %1042 = vst.msk [vmem:[%s1676_s8 + $0x268] sm:$0xff] %vm965_vm2, %v817_v29 }
 0x125   : > { %v629_v30 = vpop.f32.mrb[14].mxu0  ;;  %v821_v31 = vpop.f32.mrb[14].mxu1 }
 0x126   : > { %979 = vst [vmem:[%s1676_s8 + $0x70] sm:$0xff] %v629_v30  ;;  %v631_v32 = vpop.f32.mrb[15].mxu0  ;;  %1043 = vst [vmem:[%s1676_s8 + $0x270] sm:$0xff] %v821_v31  ;;  %v823_v33 = vpop.f32.mrb[15].mxu1 }
 0x127   : > { %980 = vst.msk [vmem:[%s1676_s8 + $0x78] sm:$0xff] %vm965_vm2, %v631_v32  ;;  %1044 = vst.msk [vmem:[%s1676_s8 + $0x278] sm:$0xff] %vm965_vm2, %v823_v33 }
 0x129   : > { %v635_v34 = vpop.f32.mrb[16].mxu0  ;;  %v827_v35 = vpop.f32.mrb[16].mxu1 }
 0x12a   : > { %981 = vst [vmem:[%s1676_s8 + $0x80] sm:$0xff] %v635_v34  ;;  %v637_v36 = vpop.f32.mrb[17].mxu0  ;;  %1045 = vst [vmem:[%s1676_s8 + $0x280] sm:$0xff] %v827_v35  ;;  %v829_v37 = vpop.f32.mrb[17].mxu1 }
 0x12b   : > { %982 = vst.msk [vmem:[%s1676_s8 + $0x88] sm:$0xff] %vm965_vm2, %v637_v36  ;;  %1046 = vst.msk [vmem:[%s1676_s8 + $0x288] sm:$0xff] %vm965_vm2, %v829_v37 }
 0x12d   : > { %v641_v38 = vpop.f32.mrb[18].mxu0  ;;  %v833_v39 = vpop.f32.mrb[18].mxu1 }
 0x12e   : > { %983 = vst [vmem:[%s1676_s8 + $0x90] sm:$0xff] %v641_v38  ;;  %v643_v40 = vpop.f32.mrb[19].mxu0  ;;  %1047 = vst [vmem:[%s1676_s8 + $0x290] sm:$0xff] %v833_v39  ;;  %v835_v41 = vpop.f32.mrb[19].mxu1 }
 0x12f   : > { %984 = vst.msk [vmem:[%s1676_s8 + $0x98] sm:$0xff] %vm965_vm2, %v643_v40  ;;  %1048 = vst.msk [vmem:[%s1676_s8 + $0x298] sm:$0xff] %vm965_vm2, %v835_v41 }
 0x131   : > { %v647_v42 = vpop.f32.mrb[20].mxu0  ;;  %v839_v43 = vpop.f32.mrb[20].mxu1 }
 0x132   : > { %985 = vst [vmem:[%s1676_s8 + $0xa0] sm:$0xff] %v647_v42  ;;  %v649_v44 = vpop.f32.mrb[21].mxu0  ;;  %1049 = vst [vmem:[%s1676_s8 + $0x2a0] sm:$0xff] %v839_v43  ;;  %v841_v45 = vpop.f32.mrb[21].mxu1 }
 0x133   : > { %986 = vst.msk [vmem:[%s1676_s8 + $0xa8] sm:$0xff] %vm965_vm2, %v649_v44  ;;  %1050 = vst.msk [vmem:[%s1676_s8 + $0x2a8] sm:$0xff] %vm965_vm2, %v841_v45 }
 0x135   : > { %v653_v46 = vpop.f32.mrb[22].mxu0  ;;  %v845_v47 = vpop.f32.mrb[22].mxu1 }
 0x136   : > { %987 = vst [vmem:[%s1676_s8 + $0xb0] sm:$0xff] %v653_v46  ;;  %v655_v48 = vpop.f32.mrb[23].mxu0  ;;  %1051 = vst [vmem:[%s1676_s8 + $0x2b0] sm:$0xff] %v845_v47  ;;  %v847_v49 = vpop.f32.mrb[23].mxu1 }
 0x137   : > { %988 = vst.msk [vmem:[%s1676_s8 + $0xb8] sm:$0xff] %vm965_vm2, %v655_v48  ;;  %1052 = vst.msk [vmem:[%s1676_s8 + $0x2b8] sm:$0xff] %vm965_vm2, %v847_v49 }
 0x139   : > { %v659_v50 = vpop.f32.mrb[24].mxu0  ;;  %v851_v51 = vpop.f32.mrb[24].mxu1 }
 0x13a   : > { %989 = vst [vmem:[%s1676_s8 + $0xc0] sm:$0xff] %v659_v50  ;;  %v661_v52 = vpop.f32.mrb[25].mxu0  ;;  %1053 = vst [vmem:[%s1676_s8 + $0x2c0] sm:$0xff] %v851_v51  ;;  %v853_v53 = vpop.f32.mrb[25].mxu1 }
 0x13b   : > { %990 = vst.msk [vmem:[%s1676_s8 + $0xc8] sm:$0xff] %vm965_vm2, %v661_v52  ;;  %1054 = vst.msk [vmem:[%s1676_s8 + $0x2c8] sm:$0xff] %vm965_vm2, %v853_v53 }
 0x13d   : > { %v665_v54 = vpop.f32.mrb[26].mxu0  ;;  %v857_v55 = vpop.f32.mrb[26].mxu1 }
 0x13e   : > { %991 = vst [vmem:[%s1676_s8 + $0xd0] sm:$0xff] %v665_v54  ;;  %v667_v56 = vpop.f32.mrb[27].mxu0  ;;  %1055 = vst [vmem:[%s1676_s8 + $0x2d0] sm:$0xff] %v857_v55  ;;  %v859_v57 = vpop.f32.mrb[27].mxu1 }
 0x13f   : > { %992 = vst.msk [vmem:[%s1676_s8 + $0xd8] sm:$0xff] %vm965_vm2, %v667_v56  ;;  %1056 = vst.msk [vmem:[%s1676_s8 + $0x2d8] sm:$0xff] %vm965_vm2, %v859_v57 }
 0x141   : > { %v671_v58 = vpop.f32.mrb[28].mxu0  ;;  %v863_v59 = vpop.f32.mrb[28].mxu1 }
 0x142   : > { %993 = vst [vmem:[%s1676_s8 + $0xe0] sm:$0xff] %v671_v58  ;;  %v673_v60 = vpop.f32.mrb[29].mxu0  ;;  %1057 = vst [vmem:[%s1676_s8 + $0x2e0] sm:$0xff] %v863_v59  ;;  %v865_v61 = vpop.f32.mrb[29].mxu1 }
 0x143   : > { %994 = vst.msk [vmem:[%s1676_s8 + $0xe8] sm:$0xff] %vm965_vm2, %v673_v60  ;;  %1058 = vst.msk [vmem:[%s1676_s8 + $0x2e8] sm:$0xff] %vm965_vm2, %v865_v61 }
 0x145   : > { %v677_v62 = vpop.f32.mrb[30].mxu0  ;;  %v869_v63 = vpop.f32.mrb[30].mxu1 }
 0x146   : > { %995 = vst [vmem:[%s1676_s8 + $0xf0] sm:$0xff] %v677_v62  ;;  %v679_v0 = vpop.f32.mrb[31].mxu0  ;;  %1059 = vst [vmem:[%s1676_s8 + $0x2f0] sm:$0xff] %v869_v63  ;;  %v871_v1 = vpop.f32.mrb[31].mxu1 }
 0x147   : > { %996 = vst.msk [vmem:[%s1676_s8 + $0xf8] sm:$0xff] %vm965_vm2, %v679_v0  ;;  %1060 = vst.msk [vmem:[%s1676_s8 + $0x2f8] sm:$0xff] %vm965_vm2, %v871_v1 }
 0x149   : > { %v683_v2 = vpop.f32.mrb[32].mxu0  ;;  %v875_v3 = vpop.f32.mrb[32].mxu1 }
 0x14a   : > { %997 = vst [vmem:[%s1676_s8 + $0x100] sm:$0xff] %v683_v2  ;;  %v685_v4 = vpop.f32.mrb[33].mxu0  ;;  %1061 = vst [vmem:[%s1676_s8 + $0x300] sm:$0xff] %v875_v3  ;;  %v877_v5 = vpop.f32.mrb[33].mxu1 }
 0x14b   : > { %998 = vst.msk [vmem:[%s1676_s8 + $0x108] sm:$0xff] %vm965_vm2, %v685_v4  ;;  %1062 = vst.msk [vmem:[%s1676_s8 + $0x308] sm:$0xff] %vm965_vm2, %v877_v5 }
 0x14d   : > { %v689_v6 = vpop.f32.mrb[34].mxu0  ;;  %v881_v7 = vpop.f32.mrb[34].mxu1 }
 0x14e   : > { %999 = vst [vmem:[%s1676_s8 + $0x110] sm:$0xff] %v689_v6  ;;  %v691_v8 = vpop.f32.mrb[35].mxu0  ;;  %1063 = vst [vmem:[%s1676_s8 + $0x310] sm:$0xff] %v881_v7  ;;  %v883_v9 = vpop.f32.mrb[35].mxu1 }
 0x14f   : > { %1000 = vst.msk [vmem:[%s1676_s8 + $0x118] sm:$0xff] %vm965_vm2, %v691_v8  ;;  %1064 = vst.msk [vmem:[%s1676_s8 + $0x318] sm:$0xff] %vm965_vm2, %v883_v9 }
 0x151   : > { %v695_v10 = vpop.f32.mrb[36].mxu0  ;;  %v887_v11 = vpop.f32.mrb[36].mxu1 }
 0x152   : > { %1001 = vst [vmem:[%s1676_s8 + $0x120] sm:$0xff] %v695_v10  ;;  %v697_v12 = vpop.f32.mrb[37].mxu0  ;;  %1065 = vst [vmem:[%s1676_s8 + $0x320] sm:$0xff] %v887_v11  ;;  %v889_v13 = vpop.f32.mrb[37].mxu1 }
 0x153   : > { %1002 = vst.msk [vmem:[%s1676_s8 + $0x128] sm:$0xff] %vm965_vm2, %v697_v12  ;;  %1066 = vst.msk [vmem:[%s1676_s8 + $0x328] sm:$0xff] %vm965_vm2, %v889_v13 }
 0x155   : > { %v701_v14 = vpop.f32.mrb[38].mxu0  ;;  %v893_v15 = vpop.f32.mrb[38].mxu1 }
 0x156   : > { %1003 = vst [vmem:[%s1676_s8 + $0x130] sm:$0xff] %v701_v14  ;;  %v703_v16 = vpop.f32.mrb[39].mxu0  ;;  %1067 = vst [vmem:[%s1676_s8 + $0x330] sm:$0xff] %v893_v15  ;;  %v895_v17 = vpop.f32.mrb[39].mxu1 }
 0x157   : > { %1004 = vst.msk [vmem:[%s1676_s8 + $0x138] sm:$0xff] %vm965_vm2, %v703_v16  ;;  %1068 = vst.msk [vmem:[%s1676_s8 + $0x338] sm:$0xff] %vm965_vm2, %v895_v17 }
 0x159   : > { %v707_v18 = vpop.f32.mrb[40].mxu0  ;;  %v899_v19 = vpop.f32.mrb[40].mxu1 }
 0x15a   : > { %1005 = vst [vmem:[%s1676_s8 + $0x140] sm:$0xff] %v707_v18  ;;  %v709_v20 = vpop.f32.mrb[41].mxu0  ;;  %1069 = vst [vmem:[%s1676_s8 + $0x340] sm:$0xff] %v899_v19  ;;  %v901_v21 = vpop.f32.mrb[41].mxu1 }
 0x15b   : > { %1006 = vst.msk [vmem:[%s1676_s8 + $0x148] sm:$0xff] %vm965_vm2, %v709_v20  ;;  %1070 = vst.msk [vmem:[%s1676_s8 + $0x348] sm:$0xff] %vm965_vm2, %v901_v21 }
 0x15d   : > { %v713_v22 = vpop.f32.mrb[42].mxu0  ;;  %v905_v23 = vpop.f32.mrb[42].mxu1 }
 0x15e   : > { %1007 = vst [vmem:[%s1676_s8 + $0x150] sm:$0xff] %v713_v22  ;;  %v715_v24 = vpop.f32.mrb[43].mxu0  ;;  %1071 = vst [vmem:[%s1676_s8 + $0x350] sm:$0xff] %v905_v23  ;;  %v907_v25 = vpop.f32.mrb[43].mxu1 }
 0x15f   : > { %1008 = vst.msk [vmem:[%s1676_s8 + $0x158] sm:$0xff] %vm965_vm2, %v715_v24  ;;  %1072 = vst.msk [vmem:[%s1676_s8 + $0x358] sm:$0xff] %vm965_vm2, %v907_v25 }
 0x161   : > { %v719_v26 = vpop.f32.mrb[44].mxu0  ;;  %v911_v27 = vpop.f32.mrb[44].mxu1 }
 0x162   : > { %1009 = vst [vmem:[%s1676_s8 + $0x160] sm:$0xff] %v719_v26  ;;  %v721_v28 = vpop.f32.mrb[45].mxu0  ;;  %1073 = vst [vmem:[%s1676_s8 + $0x360] sm:$0xff] %v911_v27  ;;  %v913_v29 = vpop.f32.mrb[45].mxu1 }
 0x163   : > { %1010 = vst.msk [vmem:[%s1676_s8 + $0x168] sm:$0xff] %vm965_vm2, %v721_v28  ;;  %1074 = vst.msk [vmem:[%s1676_s8 + $0x368] sm:$0xff] %vm965_vm2, %v913_v29 }
 0x165   : > { %v725_v30 = vpop.f32.mrb[46].mxu0  ;;  %v917_v31 = vpop.f32.mrb[46].mxu1 }
 0x166   : > { %1011 = vst [vmem:[%s1676_s8 + $0x170] sm:$0xff] %v725_v30  ;;  %v727_v32 = vpop.f32.mrb[47].mxu0  ;;  %1075 = vst [vmem:[%s1676_s8 + $0x370] sm:$0xff] %v917_v31  ;;  %v919_v33 = vpop.f32.mrb[47].mxu1 }
 0x167   : > { %1012 = vst.msk [vmem:[%s1676_s8 + $0x178] sm:$0xff] %vm965_vm2, %v727_v32  ;;  %1076 = vst.msk [vmem:[%s1676_s8 + $0x378] sm:$0xff] %vm965_vm2, %v919_v33 }
 0x169   : > { %v731_v34 = vpop.f32.mrb[48].mxu0  ;;  %v923_v35 = vpop.f32.mrb[48].mxu1 }
 0x16a   : > { %1013 = vst [vmem:[%s1676_s8 + $0x180] sm:$0xff] %v731_v34  ;;  %v733_v36 = vpop.f32.mrb[49].mxu0  ;;  %1077 = vst [vmem:[%s1676_s8 + $0x380] sm:$0xff] %v923_v35  ;;  %v925_v37 = vpop.f32.mrb[49].mxu1 }
 0x16b   : > { %1014 = vst.msk [vmem:[%s1676_s8 + $0x188] sm:$0xff] %vm965_vm2, %v733_v36  ;;  %1078 = vst.msk [vmem:[%s1676_s8 + $0x388] sm:$0xff] %vm965_vm2, %v925_v37 }
 0x16d   : > { %v737_v38 = vpop.f32.mrb[50].mxu0  ;;  %v929_v39 = vpop.f32.mrb[50].mxu1 }
 0x16e   : > { %1015 = vst [vmem:[%s1676_s8 + $0x190] sm:$0xff] %v737_v38  ;;  %v739_v40 = vpop.f32.mrb[51].mxu0  ;;  %1079 = vst [vmem:[%s1676_s8 + $0x390] sm:$0xff] %v929_v39  ;;  %v931_v41 = vpop.f32.mrb[51].mxu1 }
 0x16f   : > { %1016 = vst.msk [vmem:[%s1676_s8 + $0x198] sm:$0xff] %vm965_vm2, %v739_v40  ;;  %1080 = vst.msk [vmem:[%s1676_s8 + $0x398] sm:$0xff] %vm965_vm2, %v931_v41 }
 0x171   : > { %v743_v42 = vpop.f32.mrb[52].mxu0  ;;  %v935_v43 = vpop.f32.mrb[52].mxu1 }
 0x172   : > { %1017 = vst [vmem:[%s1676_s8 + $0x1a0] sm:$0xff] %v743_v42  ;;  %v745_v44 = vpop.f32.mrb[53].mxu0  ;;  %1081 = vst [vmem:[%s1676_s8 + $0x3a0] sm:$0xff] %v935_v43  ;;  %v937_v45 = vpop.f32.mrb[53].mxu1 }
 0x173   : > { %1018 = vst.msk [vmem:[%s1676_s8 + $0x1a8] sm:$0xff] %vm965_vm2, %v745_v44  ;;  %1082 = vst.msk [vmem:[%s1676_s8 + $0x3a8] sm:$0xff] %vm965_vm2, %v937_v45 }
 0x175   : > { %v749_v46 = vpop.f32.mrb[54].mxu0  ;;  %v941_v47 = vpop.f32.mrb[54].mxu1 }
 0x176   : > { %1019 = vst [vmem:[%s1676_s8 + $0x1b0] sm:$0xff] %v749_v46  ;;  %v751_v48 = vpop.f32.mrb[55].mxu0  ;;  %1083 = vst [vmem:[%s1676_s8 + $0x3b0] sm:$0xff] %v941_v47  ;;  %v943_v49 = vpop.f32.mrb[55].mxu1 }
 0x177   : > { %1020 = vst.msk [vmem:[%s1676_s8 + $0x1b8] sm:$0xff] %vm965_vm2, %v751_v48  ;;  %1084 = vst.msk [vmem:[%s1676_s8 + $0x3b8] sm:$0xff] %vm965_vm2, %v943_v49 }
 0x179   : > { %v755_v50 = vpop.f32.mrb[56].mxu0  ;;  %v947_v51 = vpop.f32.mrb[56].mxu1 }
 0x17a   : > { %1021 = vst [vmem:[%s1676_s8 + $0x1c0] sm:$0xff] %v755_v50  ;;  %v757_v52 = vpop.f32.mrb[57].mxu0  ;;  %1085 = vst [vmem:[%s1676_s8 + $0x3c0] sm:$0xff] %v947_v51  ;;  %v949_v53 = vpop.f32.mrb[57].mxu1 }
 0x17b   : > { %1022 = vst.msk [vmem:[%s1676_s8 + $0x1c8] sm:$0xff] %vm965_vm2, %v757_v52  ;;  %1086 = vst.msk [vmem:[%s1676_s8 + $0x3c8] sm:$0xff] %vm965_vm2, %v949_v53 }
 0x17d   : > { %v761_v54 = vpop.f32.mrb[58].mxu0  ;;  %v953_v55 = vpop.f32.mrb[58].mxu1 }
 0x17e   : > { %1023 = vst [vmem:[%s1676_s8 + $0x1d0] sm:$0xff] %v761_v54  ;;  %v763_v56 = vpop.f32.mrb[59].mxu0  ;;  %1087 = vst [vmem:[%s1676_s8 + $0x3d0] sm:$0xff] %v953_v55  ;;  %v955_v57 = vpop.f32.mrb[59].mxu1 }
 0x17f   : > { %1024 = vst.msk [vmem:[%s1676_s8 + $0x1d8] sm:$0xff] %vm965_vm2, %v763_v56  ;;  %1088 = vst.msk [vmem:[%s1676_s8 + $0x3d8] sm:$0xff] %vm965_vm2, %v955_v57 }
 0x181   : > { %v767_v58 = vpop.f32.mrb[60].mxu0  ;;  %v959_v59 = vpop.f32.mrb[60].mxu1 }
 0x182   : > { %1025 = vst [vmem:[%s1676_s8 + $0x1e0] sm:$0xff] %v767_v58  ;;  %v769_v60 = vpop.f32.mrb[61].mxu0  ;;  %1089 = vst [vmem:[%s1676_s8 + $0x3e0] sm:$0xff] %v959_v59  ;;  %v961_v61 = vpop.f32.mrb[61].mxu1 }
 0x183   : > { %1026 = vst.msk [vmem:[%s1676_s8 + $0x1e8] sm:$0xff] %vm965_vm2, %v769_v60  ;;  %1090 = vst.msk [vmem:[%s1676_s8 + $0x3e8] sm:$0xff] %vm965_vm2, %v961_v61 }
 0x185   : > { %v773_v62 = vpop.f32.mrb[62].mxu0 }
 0x186   : > { %1027 = vst [vmem:[%s1676_s8 + $0x1f0] sm:$0xff] %v773_v62  ;;  %v775_v63 = vpop.f32.mrb[63].mxu0 }
 0x187   : > { %1028 = vst.msk [vmem:[%s1676_s8 + $0x1f8] sm:$0xff] %vm965_vm2, %v775_v63 }
 0x188 PF: > { %s12_s9 = sadd.s32 1, %s1309_s9  }
 0x189   : > { %p9_p4 = scmp.ge.s32.totalorder %s12_s9, 4  }
 0x18b   :  { %11 = sbr.rel (!%p9_p4) target bundleno = 1 (0x1), region = 58 }

</bundles_post_ra>
